<compile_context>
chip_gen: v7x
topology: tpu7x:2x2x1
jax: 0.10.0
libtpu: 0.0.40
codegen_flags: <defaults>
</compile_context>

<pallas_src>
import functools
import math

import jax
import jax.numpy as jnp
from jax.experimental import pallas as pl
from jax.experimental.pallas import tpu as pltpu

# Explicit scoped-VMEM cap: larger than v5e's 16 MiB default, comfortably
# under v7x's 64 MiB physical budget.
_VMEM_LIMIT = 48 * 1024 * 1024


# ----------------------------------------------------------------------------
# Tile-size helper: largest multiple of `granule` <= preferred that divides
# dim, else the full dim (legal as a full-extent block).
# ----------------------------------------------------------------------------
def _tile(dim, preferred, granule):
    if dim <= preferred:
        return dim
    t = (preferred // granule) * granule
    while t >= granule:
        if dim % t == 0:
            return t
        t -= granule
    return dim


# ----------------------------------------------------------------------------
# Kernel 1: tiled linear projection  y = x @ W_t + b
#   x: (N, D_in), W_t: (D_in, D_out) [pre-transposed], b: (1, D_out)
# ----------------------------------------------------------------------------
def _linear_kernel(x_ref, w_ref, b_ref, o_ref, acc_ref):
    @pl.when(pl.program_id(2) == 0)
    def _():
        acc_ref[...] = jnp.zeros_like(acc_ref)

    acc_ref[...] += jnp.dot(x_ref[...], w_ref[...],
                            preferred_element_type=jnp.float32)

    @pl.when(pl.program_id(2) == pl.num_programs(2) - 1)
    def _():
        o_ref[...] = (acc_ref[...] + b_ref[...].astype(jnp.float32)).astype(o_ref.dtype)


def linear(x, w_t, b, *, tm=1024, tn=512, tk=512):
    """y = x @ w_t + b.  x: (N, D_in), w_t: (D_in, D_out), b: (D_out,)."""
    n, d_in = x.shape
    d_out = w_t.shape[1]
    bm = _tile(n, tm, 8)
    bn = _tile(d_out, tn, 128)
    bk = _tile(d_in, tk, 128)
    grid = (n // bm, d_out // bn, d_in // bk)
    return pl.pallas_call(
        _linear_kernel,
        out_shape=jax.ShapeDtypeStruct((n, d_out), x.dtype),
        grid_spec=pltpu.PrefetchScalarGridSpec(
            num_scalar_prefetch=0,
            grid=grid,
            in_specs=[
                pl.BlockSpec((bm, bk), lambda i, j, k: (i, k)),
                pl.BlockSpec((bk, bn), lambda i, j, k: (k, j)),
                pl.BlockSpec((1, bn), lambda i, j, k: (0, j)),
            ],
            out_specs=pl.BlockSpec((bm, bn), lambda i, j, k: (i, j)),
            scratch_shapes=[pltpu.VMEM((bm, bn), jnp.float32)],
        ),
        compiler_params=pltpu.CompilerParams(
            dimension_semantics=("parallel", "parallel", "arbitrary"),
            vmem_limit_bytes=_VMEM_LIMIT),
    )(x, w_t, b.reshape(1, d_out))


# ----------------------------------------------------------------------------
# Kernel 2: multi-head scaled-dot-product attention.
# Grid = (batch, Sq tiles). Per grid step:
#   q:  (1, tq, hidden)     -- all heads, lane-dense (scale pre-folded into Wq)
#   kv: (1, Sk, 2*hidden)   -- fused [K | V] projection output, resident
#                              across q tiles (index_map ignores the q axis)
#   m:  (1, 1, Sk)          -- additive padding mask (broadcast over queries)
#   o:  (1, tq, hidden)     -- lane-dense output, one full store
#   acc:(tq, hidden) f32 VMEM scratch -- per-head results written in place
# ----------------------------------------------------------------------------
def _attention_kernel(q_ref, kv_ref, m_ref, o_ref, acc_ref, *,
                      num_heads, head_dim):
    hidden = num_heads * head_dim
    tq = q_ref.shape[1]
    sk = kv_ref.shape[1]

    # Hoisted: one (1,Sk)->(tq,Sk) broadcast shared by all heads.
    mask_b = jnp.broadcast_to(m_ref[0].astype(jnp.float32), (tq, sk))
    # Contract the last dims of q_h and k_h: q_h @ k_h.T without an explicit
    # transpose on the XLU.
    dn_qk = (((1,), (1,)), ((), ()))

    for h in range(num_heads):                     # static unrolled head loop
        lo = h * head_dim
        q_h = q_ref[0, :, lo:lo + head_dim]                      # (tq, d)
        k_h = kv_ref[0, :, lo:lo + head_dim]                     # (Sk, d)
        v_h = kv_ref[0, :, hidden + lo:hidden + lo + head_dim]   # (Sk, d)

        # 1/sqrt(head_dim) already folded into the query weights/bias at init.
        s = jax.lax.dot_general(q_h, k_h, dn_qk,
                                preferred_element_type=jnp.float32)  # (tq, Sk)
        s = s + mask_b
        s = s - jnp.max(s, axis=-1, keepdims=True)
        p = jnp.exp(s)
        l = jnp.sum(p, axis=-1, keepdims=True)
        inv = pl.reciprocal(l, approx=True)        # EUP slot
        inv = inv * (2.0 - l * inv)                # one Newton step -> near-exact
        p = p * inv
        # TODO(synk): attention-probs dropout omitted (eval-mode identity);
        # training parity would need pltpu.prng_seed / prng_random_bits.
        acc_ref[:, lo:lo + head_dim] = jnp.dot(
            p.astype(v_h.dtype), v_h, preferred_element_type=jnp.float32)

    # One lane-dense store of the whole (tq, hidden) row-slab.
    o_ref[0] = acc_ref[...].astype(o_ref.dtype)
    # TODO(synk): for Sk >~ 2k (especially v7x, 64 MiB VMEM) tile the KV axis
    # with an online-softmax (flash) accumulator instead of full (tq, Sk) scores.


def fused_attention(q, kv, mask, num_heads, *, tq_pref=256):
    """q: (B, Sq, hidden), kv: (B, Sk, 2*hidden), mask: (B, 1, Sk) additive."""
    b, sq, hidden = q.shape
    sk = kv.shape[1]
    head_dim = hidden // num_heads
    tq = _tile(sq, tq_pref, 8)
    kernel = functools.partial(_attention_kernel,
                               num_heads=num_heads, head_dim=head_dim)
    return pl.pallas_call(
        kernel,
        out_shape=jax.ShapeDtypeStruct((b, sq, hidden), q.dtype),
        grid_spec=pltpu.PrefetchScalarGridSpec(
            num_scalar_prefetch=0,
            grid=(b, sq // tq),
            in_specs=[
                pl.BlockSpec((1, tq, hidden), lambda bi, qi: (bi, qi, 0)),
                # KV / mask stay resident across q tiles (index ignores qi).
                pl.BlockSpec((1, sk, 2 * hidden), lambda bi, qi: (bi, 0, 0)),
                pl.BlockSpec((1, 1, sk), lambda bi, qi: (bi, 0, 0)),
            ],
            out_specs=pl.BlockSpec((1, tq, hidden), lambda bi, qi: (bi, qi, 0)),
            scratch_shapes=[pltpu.VMEM((tq, hidden), jnp.float32)],
        ),
        compiler_params=pltpu.CompilerParams(
            dimension_semantics=("parallel", "parallel"),
            vmem_limit_bytes=_VMEM_LIMIT),
    )(q, kv, mask)


# ----------------------------------------------------------------------------
# BertAttention module (JAX glue around the Pallas kernels)
# ----------------------------------------------------------------------------
class BertAttentionPallas:
    def __init__(self, hidden_size, num_attention_heads,
                 attention_probs_dropout_prob=0.0, ctx_dim=None,
                 key=None, dtype=jnp.float32):
        if hidden_size % num_attention_heads != 0:
            raise ValueError("hidden_size must be divisible by num_attention_heads")
        self.num_heads = num_attention_heads
        self.head_dim = hidden_size // num_attention_heads
        self.all_head_size = hidden_size
        self.dropout_prob = attention_probs_dropout_prob  # eval-mode identity
        self.dtype = dtype
        if ctx_dim is None:
            ctx_dim = hidden_size

        key = jax.random.PRNGKey(0) if key is None else key
        ks = jax.random.split(key, 6)
        init = lambda k, shape, fan_in: jax.random.uniform(
            k, shape, jnp.float32, -1.0 / math.sqrt(fan_in), 1.0 / math.sqrt(fan_in))

        # PyTorch nn.Linear stores weight as (out, in); pre-transpose once to
        # (in, out) so the kernels never transpose on the MXU critical path.
        wq = init(ks[0], (hidden_size, hidden_size), hidden_size)
        wk = init(ks[2], (hidden_size, ctx_dim), ctx_dim)
        wv = init(ks[4], (hidden_size, ctx_dim), ctx_dim)
        bq = init(ks[1], (hidden_size,), hidden_size)
        bk = init(ks[3], (hidden_size,), ctx_dim)
        bv = init(ks[5], (hidden_size,), ctx_dim)

        # Unscaled params (f32) kept for the pure-JAX reference / PyTorch parity.
        self.wq_t = wq.T
        self.bq = bq
        self.wkv_t = jnp.concatenate([wk.T, wv.T], axis=1)   # (ctx, 2*hidden)
        self.bkv = jnp.concatenate([bk, bv])

        # Kernel-side params: 1/sqrt(head_dim) folded into the query projection
        # (zero runtime cost; removes H*Sq*Sk VALU multiplies per batch).
        scale = 1.0 / math.sqrt(self.head_dim)
        self._wq_t_k = (self.wq_t * scale).astype(dtype)
        self._bq_k = (self.bq * scale).astype(dtype)
        self._wkv_t_k = self.wkv_t.astype(dtype)
        self._bkv_k = self.bkv.astype(dtype)

    def __call__(self, hidden_states, context, attention_mask=None):
        b, sq, _ = hidden_states.shape
        sk = context.shape[1]
        h = self.all_head_size

        hidden_states = hidden_states.astype(self.dtype)
        context = context.astype(self.dtype)

        # Q projection (scale pre-folded).
        q = linear(hidden_states.reshape(b * sq, -1), self._wq_t_k, self._bq_k)
        q = q.reshape(b, sq, h)
        # Fused K/V projection: context is read from HBM once.
        kv = linear(context.reshape(b * sk, -1), self._wkv_t_k, self._bkv_k)
        kv = kv.reshape(b, sk, 2 * h)

        if attention_mask is None:
            mask = jnp.zeros((b, 1, sk), jnp.float32)
        else:
            # Accepts BERT-style (B, 1, 1, Sk) additive padding masks; a
            # per-query (causal) mask would need a (B, Sq, Sk) path instead.
            mask = attention_mask.reshape(b, 1, sk).astype(jnp.float32)

        return fused_attention(q, kv, mask, self.num_heads)   # (B, Sq, hidden)


# ----------------------------------------------------------------------------
# Pure-JAX reference (PyTorch semantics, unscaled weights) for correctness.
# ----------------------------------------------------------------------------
def _reference(mod, hidden_states, context, attention_mask):
    b, sq, _ = hidden_states.shape
    sk = context.shape[1]
    h = mod.all_head_size
    q = hidden_states @ mod.wq_t + mod.bq
    kv = context @ mod.wkv_t + mod.bkv
    k, v = kv[..., :h], kv[..., h:]
    q = q.reshape(b, sq, mod.num_heads, mod.head_dim).transpose(0, 2, 1, 3)
    k = k.reshape(b, sk, mod.num_heads, mod.head_dim).transpose(0, 2, 1, 3)
    v = v.reshape(b, sk, mod.num_heads, mod.head_dim).transpose(0, 2, 1, 3)
    s = jnp.einsum("bhqd,bhkd->bhqk", q, k) / math.sqrt(mod.head_dim)
    if attention_mask is not None:
        s = s + attention_mask
    p = jax.nn.softmax(s, axis=-1)
    ctx = jnp.einsum("bhqk,bhkd->bhqd", p, v)
    return ctx.transpose(0, 2, 1, 3).reshape(b, sq, h)


if __name__ == "__main__":
    # Small but TPU-friendly shapes: head_dim = 128 keeps every per-head slice
    # lane-aligned while still exercising the multi-head path.
    B, Sq, Sk, HIDDEN, HEADS = 2, 16, 16, 256, 2

    key = jax.random.PRNGKey(0)
    k_h, k_c, k_m, k_p = jax.random.split(key, 4)
    hidden_states = jax.random.normal(k_h, (B, Sq, HIDDEN), jnp.float32)
    context = jax.random.normal(k_c, (B, Sk, HIDDEN), jnp.float32)
    # BERT-style additive mask: 0 for keep, -10000 for masked-out key positions.
    keep = (jax.random.uniform(k_m, (B, Sk)) > 0.2).astype(jnp.float32)
    attention_mask = ((1.0 - keep) * -10000.0).reshape(B, 1, 1, Sk)

    mod = BertAttentionPallas(HIDDEN, HEADS, attention_probs_dropout_prob=0.0,
                              key=k_p, dtype=jnp.float32)

    out = mod(hidden_states, context, attention_mask)
    out = jax.block_until_ready(out)

    ref = _reference(mod, hidden_states, context, attention_mask)
    assert out.shape == (B, Sq, HIDDEN)
    assert jnp.allclose(out, ref, atol=2e-3, rtol=2e-3), "mismatch vs reference"

    print("KERNEL_OK")
</pallas_src>

<mosaic_0001>
module attributes {stable_mosaic.version = 11 : i64} {
  func.func @_linear_kernel(%arg0: i32, %arg1: i32, %arg2: i32, %arg3: memref<32x256xf32, #tpu.memory_space<vmem>>, %arg4: memref<256x256xf32, #tpu.memory_space<vmem>>, %arg5: memref<1x256xf32, #tpu.memory_space<vmem>>, %arg6: memref<32x256xf32, #tpu.memory_space<vmem>>, %arg7: memref<32x256xf32, #tpu.memory_space<vmem>>) attributes {dimension_semantics = [#tpu.dimension_semantics<parallel>, #tpu.dimension_semantics<parallel>, #tpu.dimension_semantics<arbitrary>], iteration_bounds = array<i64: 1, 1, 1>, scalar_prefetch = 0 : i64, scratch_operands = 1 : i64, tpu.core_type = #tpu.core_type<tc>, window_params = [{transform_indices = @transform_0, window_bounds = array<i64: 32, 256>}, {transform_indices = @transform_1, window_bounds = array<i64: 256, 256>}, {transform_indices = @transform_2, window_bounds = array<i64: 1, 256>}, {transform_indices = @transform_3, window_bounds = array<i64: 32, 256>}]} {
    %c0_i32 = arith.constant 0 : i32
    %0 = arith.cmpi eq, %arg2, %c0_i32 : i32
    %1 = arith.extui %0 : i1 to i32
    %c0_i32_0 = arith.constant 0 : i32
    %2 = arith.cmpi ne, %1, %c0_i32_0 : i32
    scf.if %2 {
      %cst_10 = arith.constant 0.000000e+00 : f32
      %12 = vector.broadcast %cst_10 : f32 to vector<32x256xf32>
      %c0_11 = arith.constant 0 : index
      %c0_12 = arith.constant 0 : index
      %13 = vector.load %arg7[%c0_11, %c0_12] : memref<32x256xf32, #tpu.memory_space<vmem>>, vector<32x256xf32>
      tpu.vector_store %arg7[%c0_11, %c0_12], %12 {strides = array<i32>} : memref<32x256xf32, #tpu.memory_space<vmem>>, vector<32x256xf32>,
    } else {
    }
    %c0 = arith.constant 0 : index
    %c0_1 = arith.constant 0 : index
    %3 = vector.load %arg7[%c0, %c0_1] : memref<32x256xf32, #tpu.memory_space<vmem>>, vector<32x256xf32>
    %c0_2 = arith.constant 0 : index
    %c0_3 = arith.constant 0 : index
    %4 = vector.load %arg3[%c0_2, %c0_3] : memref<32x256xf32, #tpu.memory_space<vmem>>, vector<32x256xf32>
    %c0_4 = arith.constant 0 : index
    %c0_5 = arith.constant 0 : index
    %5 = vector.load %arg4[%c0_4, %c0_5] : memref<256x256xf32, #tpu.memory_space<vmem>>, vector<256x256xf32>
    %cst = arith.constant dense<0.000000e+00> : vector<32x256xf32>
    %6 = tpu.matmul %4, %5, %cst {dimension_numbers = #tpu.dot_dimension_numbers<[1], [0], [0], [1], [0, 0, 1, 1], [], []>} : vector<32x256xf32>, vector<256x256xf32>, vector<32x256xf32> -> vector<32x256xf32>
    %7 = arith.addf %3, %6 : vector<32x256xf32>
    %c0_6 = arith.constant 0 : index
    %c0_7 = arith.constant 0 : index
    %8 = vector.load %arg7[%c0_6, %c0_7] : memref<32x256xf32, #tpu.memory_space<vmem>>, vector<32x256xf32>
    tpu.vector_store %arg7[%c0_6, %c0_7], %7 {strides = array<i32>} : memref<32x256xf32, #tpu.memory_space<vmem>>, vector<32x256xf32>,
    %c0_i32_8 = arith.constant 0 : i32
    %9 = arith.cmpi eq, %arg2, %c0_i32_8 : i32
    %10 = arith.extui %9 : i1 to i32
    %c0_i32_9 = arith.constant 0 : i32
    %11 = arith.cmpi ne, %10, %c0_i32_9 : i32
    scf.if %11 {
      %c0_10 = arith.constant 0 : index
      %c0_11 = arith.constant 0 : index
      %12 = vector.load %arg7[%c0_10, %c0_11] : memref<32x256xf32, #tpu.memory_space<vmem>>, vector<32x256xf32>
      %c0_12 = arith.constant 0 : index
      %c0_13 = arith.constant 0 : index
      %13 = vector.load %arg5[%c0_12, %c0_13] : memref<1x256xf32, #tpu.memory_space<vmem>>, vector<1x256xf32>
      %14 = vector.broadcast %13 : vector<1x256xf32> to vector<32x256xf32>
      %15 = arith.addf %12, %14 : vector<32x256xf32>
      %c0_14 = arith.constant 0 : index
      %c0_15 = arith.constant 0 : index
      %16 = vector.load %arg6[%c0_14, %c0_15] : memref<32x256xf32, #tpu.memory_space<vmem>>, vector<32x256xf32>
      tpu.vector_store %arg6[%c0_14, %c0_15], %15 {strides = array<i32>} : memref<32x256xf32, #tpu.memory_space<vmem>>, vector<32x256xf32>,
    } else {
    }
    return
  }
  func.func @transform_0(%arg0: i32, %arg1: i32, %arg2: i32) -> (i32, i32) {
    %c0_i32 = arith.constant 0 : i32
    return %arg0, %arg2 : i32, i32
  }
  func.func @transform_1(%arg0: i32, %arg1: i32, %arg2: i32) -> (i32, i32) {
    %c0_i32 = arith.constant 0 : i32
    return %arg2, %arg1 : i32, i32
  }
  func.func @transform_2(%arg0: i32, %arg1: i32, %arg2: i32) -> (i32, i32) {
    %c0_i32 = arith.constant 0 : i32
    %c0_i32_0 = arith.constant 0 : i32
    return %c0_i32, %arg1 : i32, i32
  }
  func.func @transform_3(%arg0: i32, %arg1: i32, %arg2: i32) -> (i32, i32) {
    %c0_i32 = arith.constant 0 : i32
    return %arg0, %arg1 : i32, i32
  }
}

</mosaic_0001>

<bundles_post_ra>
// kernel: tpu_custom_call.1
= control target key start
LH: loop header
LB: loop body
LE: loop exit
PB: predicated region body
PF: predicated region fallthrough
CT: control target
= control target key end

     0   :  { %8 = vsyncpa [#allocation4], 0  ;;  %s543_s0 = inlined_call_operand.hbm [shape: f32[32,256], index: 0, kind: input, shape index: {}]   ;;  %s544_s1 = inlined_call_operand.hbm [shape: f32[256,256], index: 1, kind: input, shape index: {}]   ;;  %s545_s2 = inlined_call_operand.vmem [shape: f32[1,256], index: 2, kind: input, shape index: {}]   ;;  %s546_s3 = inlined_call_operand.hbm [shape: f32[32,256], index: 3, kind: output, shape index: {}]  }
   0x1   :  { %9 = vsyncpa [#allocation7], 0 }
   0x2   :  { %10 = vsyncpa [#allocation5], 0  ;;  %s470_s12 = smov [#allocation3]   ;;  %s398_s16 = scalar_lea.hbm %s543_s0, 1024 }
   0x3   :  { %s16_s13 = sshll.u32 %s470_s12, 4  ;;  %p399_p0 = scmp.ne.s32.totalorder %s543_s0, %s398_s16  ;;  %s17_s13 = int_to_ptr.vmem [resolvable:$true] %s16_s13 }
   0x4   :  { %p402_p1 = scmp.lt.u32.totalorder %s398_s16, %s543_s0 }
   0x6   :  { %p404_p2 = pnand %p402_p1, %p399_p0 }
   0x8   :  { %407 = shalt.err (!%p404_p2)
}
   0x9   :  { %s408_s21 = scalar_lea.vmem %s17_s13, 1024  ;;  %p413_p4 = scmp.lt.s32.totalorder %s17_s13, %s17_s13 }
   0xa   :  { %p409_p3 = scmp.ne.s32.totalorder %s17_s13, %s408_s21  ;;  %p414_p5 = scmp.lt.s32.totalorder %s408_s21, %s408_s21 }
   0xc   :  { %p415_p6 = por %p414_p5, %p413_p4 }
   0xe   :  { %p416_p7 = pnand %p415_p6, %p409_p3 }
  0x10   :  { %419 = shalt.err (!%p416_p7)
}
  0x11   :  { %s471_s22 = smov 256   ;;  %s472_s23 = smov 16  }
  0x12   :  { %22 = dma.hbm_to_vmem [thread:$0]  %s543_s0, 1024, %s17_s13, [#allocation4], %s471_s22, %s471_s22, %s472_s23  }
  0x13   :  { %s473_s26 = smov [#allocation6]   ;;  %s420_s30 = scalar_lea.hbm %s544_s1, 8192 }
  0x14   :  { %s28_s27 = sshll.u32 %s473_s26, 4  ;;  %p421_p8 = scmp.ne.s32.totalorder %s544_s1, %s420_s30  ;;  %s29_s27 = int_to_ptr.vmem [resolvable:$true] %s28_s27 }
  0x15   :  { %p424_p9 = scmp.lt.u32.totalorder %s420_s30, %s544_s1 }
  0x17   :  { %p426_p10 = pnand %p424_p9, %p421_p8 }
  0x19   :  { %429 = shalt.err (!%p426_p10)
}
  0x1a   :  { %s430_s8 = scalar_lea.vmem %s29_s27, 8192  ;;  %p435_p12 = scmp.lt.s32.totalorder %s29_s27, %s29_s27 }
  0x1b   :  { %p431_p11 = scmp.ne.s32.totalorder %s29_s27, %s430_s8  ;;  %p436_p13 = scmp.lt.s32.totalorder %s430_s8, %s430_s8 }
  0x1d   :  { %p437_p0 = por %p436_p13, %p435_p12 }
  0x1f   :  { %p438_p1 = pnand %p437_p0, %p431_p11 }
  0x21   :  { %441 = shalt.err (!%p438_p1)
}
  0x22   :  { %34 = dma.hbm_to_vmem [thread:$0]  %s544_s1, 8192, %s29_s27, [#allocation7], %s471_s22, %s471_s22, %s472_s23  }
  0x23   :  { %464 = dma.done.wait [#allocation4], 1024  }
  0x24   :  { %465 = vsyncadd [#allocation4], 4294966272 }
  0x25   :  { %466 = dma.done.wait [#allocation7], 8192  }
  0x26   :  { %467 = vsyncadd [#allocation7], 4294959104  ;;  %v72_v0 = vld [vmem:[#allocation6 + $0x8] sm:$0xff]  ;;  %v74_v1 = vld [vmem:[#allocation6 + $0x18] sm:$0xff]  ;;  %s474_s11 = smov [#allocation8]  }
  0x27   :  { %v71_v2 = vld [vmem:[#allocation6] sm:$0xff]  ;;  %v297_v3 = vpack.c.bf16 %v74_v1, %v72_v0  ;;  %v73_v4 = vld [vmem:[#allocation6 + $0x10] sm:$0xff]  ;;  %v76_v5 = vld [vmem:[#allocation6 + $0x28] sm:$0xff]  ;;  %s284_s12 = sshll.u32 %s474_s11, 4  ;;  %s285_s12 = int_to_ptr.vmem [resolvable:$true] %s284_s12 }
  0x28   :  { %v78_v6 = vld [vmem:[#allocation6 + $0x38] sm:$0xff]  ;;  %v299_v7 = vpack.c.bf16 %v73_v4, %v71_v2  ;;  %v75_v9 = vld [vmem:[#allocation6 + $0x20] sm:$0xff]  ;;  %v77_v10 = vld [vmem:[#allocation6 + $0x30] sm:$0xff]  ;;  %p447_p3 = scmp.lt.s32.totalorder %s285_s12, %s285_s12 }
  0x29   :  { %v301_v8 = vpack.c.bf16 %v78_v6, %v76_v5  ;;  %v80_v11 = vld [vmem:[#allocation6 + $0x48] sm:$0xff]  ;;  %298 = vmatprep.subr.bf16.mxu0 %v297_v3  ;;  %361 = vmatprep.subr.bf16.mxu1 %v297_v3  ;;  %v82_v12 = vld [vmem:[#allocation6 + $0x58] sm:$0xff]  ;;  %v303_v13 = vpack.c.bf16 %v77_v10, %v75_v9  ;;  %v79_v15 = vld [vmem:[#allocation6 + $0x40] sm:$0xff] }
  0x2a   :  { %300 = vmatpush1.bf16.msra.mxu0 %v299_v7  ;;  %377 = vmatpush1.bf16.msra.mxu1 %v299_v7  ;;  %v305_v14 = vpack.c.bf16 %v82_v12, %v80_v11  ;;  %v81_v16 = vld [vmem:[#allocation6 + $0x50] sm:$0xff]  ;;  %v84_v17 = vld [vmem:[#allocation6 + $0x68] sm:$0xff]  ;;  %v86_v18 = vld [vmem:[#allocation6 + $0x78] sm:$0xff] }
  0x2b   :  { %302 = vmatprep.subr.bf16.mxu0 %v301_v8  ;;  %362 = vmatprep.subr.bf16.mxu1 %v301_v8  ;;  %v307_v19 = vpack.c.bf16 %v81_v16, %v79_v15  ;;  %v309_v20 = vpack.c.bf16 %v86_v18, %v84_v17  ;;  %v83_v21 = vld [vmem:[#allocation6 + $0x60] sm:$0xff]  ;;  %v85_v22 = vld [vmem:[#allocation6 + $0x70] sm:$0xff]  ;;  %v88_v23 = vld [vmem:[#allocation6 + $0x88] sm:$0xff] }
  0x2c   :  { %v90_v24 = vld [vmem:[#allocation6 + $0x98] sm:$0xff]  ;;  %v311_v25 = vpack.c.bf16 %v85_v22, %v83_v21  ;;  %v87_v27 = vld [vmem:[#allocation6 + $0x80] sm:$0xff]  ;;  %v89_v28 = vld [vmem:[#allocation6 + $0x90] sm:$0xff] }
  0x2d   :  { %v313_v26 = vpack.c.bf16 %v90_v24, %v88_v23  ;;  %v92_v29 = vld [vmem:[#allocation6 + $0xa8] sm:$0xff]  ;;  %v94_v30 = vld [vmem:[#allocation6 + $0xb8] sm:$0xff]  ;;  %v315_v31 = vpack.c.bf16 %v89_v28, %v87_v27  ;;  %v91_v33 = vld [vmem:[#allocation6 + $0xa0] sm:$0xff] }
  0x2e   :  { %304 = vmatpush1.bf16.msra.mxu0 %v303_v13  ;;  %378 = vmatpush1.bf16.msra.mxu1 %v303_v13  ;;  %v317_v32 = vpack.c.bf16 %v94_v30, %v92_v29  ;;  %v93_v34 = vld [vmem:[#allocation6 + $0xb0] sm:$0xff]  ;;  %v96_v35 = vld [vmem:[#allocation6 + $0xc8] sm:$0xff]  ;;  %v98_v36 = vld [vmem:[#allocation6 + $0xd8] sm:$0xff] }
  0x2f   :  { %306 = vmatprep.subr.bf16.mxu0 %v305_v14  ;;  %363 = vmatprep.subr.bf16.mxu1 %v305_v14  ;;  %v319_v37 = vpack.c.bf16 %v93_v34, %v91_v33  ;;  %v95_v38 = vld [vmem:[#allocation6 + $0xc0] sm:$0xff]  ;;  %v321_v39 = vpack.c.bf16 %v98_v36, %v96_v35  ;;  %v97_v40 = vld [vmem:[#allocation6 + $0xd0] sm:$0xff]  ;;  %v64_v41 = vld [vmem:[#allocation3 + $0x8] sm:$0xff] }
  0x30   :  { %v68_v42 = vld [vmem:[#allocation3 + $0x28] sm:$0xff]  ;;  %v102_v44 = vld [vmem:[#allocation6 + $0xf8] sm:$0xff]  ;;  %199 = vmatprep.mubr.f32.mxu0 %v64_v41  ;;  %v323_v45 = vpack.c.bf16 %v97_v40, %v95_v38  ;;  %v99_v47 = vld [vmem:[#allocation6 + $0xe0] sm:$0xff]  ;;  %v253_v40 = vlaneseq }
  0x31   :  { %v100_v43 = vld [vmem:[#allocation6 + $0xe8] sm:$0xff]  ;;  %211 = vmatprep.mubr.f32.mxu1 %v68_v42  ;;  %v101_v48 = vld [vmem:[#allocation6 + $0xf0] sm:$0xff]  ;;  %v106_v50 = vld [vmem:[#allocation6 + $0x118] sm:$0xff] }
  0x32   :  { %308 = vmatpush1.bf16.msra.mxu0 %v307_v19  ;;  %379 = vmatpush1.bf16.msra.mxu1 %v307_v19  ;;  %v325_v46 = vpack.c.bf16 %v102_v44, %v100_v43  ;;  %v104_v49 = vld [vmem:[#allocation6 + $0x108] sm:$0xff]  ;;  %v327_v51 = vpack.c.bf16 %v101_v48, %v99_v47  ;;  %v103_v53 = vld [vmem:[#allocation6 + $0x100] sm:$0xff]  ;;  %v105_v54 = vld [vmem:[#allocation6 + $0x110] sm:$0xff]  ;;  %v254_v41 = vshrl.u32 %v253_v40, 7 }
  0x33   :  { %310 = vmatprep.subr.bf16.mxu0 %v309_v20  ;;  %364 = vmatprep.subr.bf16.mxu1 %v309_v20  ;;  %v329_v52 = vpack.c.bf16 %v106_v50, %v104_v49  ;;  %v108_v55 = vld [vmem:[#allocation6 + $0x128] sm:$0xff]  ;;  %v110_v56 = vld [vmem:[#allocation6 + $0x138] sm:$0xff]  ;;  %v331_v57 = vpack.c.bf16 %v105_v54, %v103_v53  ;;  %v107_v59 = vld [vmem:[#allocation6 + $0x120] sm:$0xff] }
  0x34   :  { %v333_v58 = vpack.c.bf16 %v110_v56, %v108_v55  ;;  %v109_v60 = vld [vmem:[#allocation6 + $0x130] sm:$0xff]  ;;  %v112_v61 = vld [vmem:[#allocation6 + $0x148] sm:$0xff]  ;;  %v114_v62 = vld [vmem:[#allocation6 + $0x158] sm:$0xff]  ;;  %v255_v42 = vsub.s32 0, %v254_v41  ;;  %v259_v44 = vsub.s32 1, %v254_v41 }
  0x35   :  { %v335_v63 = vpack.c.bf16 %v109_v60, %v107_v59  ;;  %v337_v0 = vpack.c.bf16 %v114_v62, %v112_v61  ;;  %v111_v1 = vld [vmem:[#allocation6 + $0x140] sm:$0xff]  ;;  %v113_v2 = vld [vmem:[#allocation6 + $0x150] sm:$0xff]  ;;  %v116_v3 = vld [vmem:[#allocation6 + $0x168] sm:$0xff] }
  0x36   :  { %312 = vmatpush1.bf16.msra.mxu0 %v311_v25  ;;  %380 = vmatpush1.bf16.msra.mxu1 %v311_v25  ;;  %v118_v4 = vld [vmem:[#allocation6 + $0x178] sm:$0xff]  ;;  %v339_v5 = vpack.c.bf16 %v113_v2, %v111_v1  ;;  %v115_v7 = vld [vmem:[#allocation6 + $0x160] sm:$0xff]  ;;  %v117_v8 = vld [vmem:[#allocation6 + $0x170] sm:$0xff] }
  0x37   :  { %314 = vmatprep.subr.bf16.mxu0 %v313_v26  ;;  %365 = vmatprep.subr.bf16.mxu1 %v313_v26  ;;  %v341_v6 = vpack.c.bf16 %v118_v4, %v116_v3  ;;  %v120_v9 = vld [vmem:[#allocation6 + $0x188] sm:$0xff]  ;;  %v122_v10 = vld [vmem:[#allocation6 + $0x198] sm:$0xff]  ;;  %v343_v11 = vpack.c.bf16 %v117_v8, %v115_v7  ;;  %v119_v13 = vld [vmem:[#allocation6 + $0x180] sm:$0xff] }
  0x38   :  { %v345_v12 = vpack.c.bf16 %v122_v10, %v120_v9  ;;  %v121_v14 = vld [vmem:[#allocation6 + $0x190] sm:$0xff]  ;;  %v124_v15 = vld [vmem:[#allocation6 + $0x1a8] sm:$0xff]  ;;  %v126_v16 = vld [vmem:[#allocation6 + $0x1b8] sm:$0xff] }
  0x39   :  { %v347_v17 = vpack.c.bf16 %v121_v14, %v119_v13  ;;  %v349_v18 = vpack.c.bf16 %v126_v16, %v124_v15  ;;  %v123_v19 = vld [vmem:[#allocation6 + $0x1a0] sm:$0xff]  ;;  %v125_v20 = vld [vmem:[#allocation6 + $0x1b0] sm:$0xff]  ;;  %v128_v21 = vld [vmem:[#allocation6 + $0x1c8] sm:$0xff] }
  0x3a   :  { %316 = vmatpush1.bf16.msra.mxu0 %v315_v31  ;;  %381 = vmatpush1.bf16.msra.mxu1 %v315_v31  ;;  %v130_v22 = vld [vmem:[#allocation6 + $0x1d8] sm:$0xff]  ;;  %v351_v23 = vpack.c.bf16 %v125_v20, %v123_v19  ;;  %v127_v25 = vld [vmem:[#allocation6 + $0x1c0] sm:$0xff]  ;;  %v129_v26 = vld [vmem:[#allocation6 + $0x1d0] sm:$0xff] }
  0x3b   :  { %318 = vmatprep.subr.bf16.mxu0 %v317_v32  ;;  %366 = vmatprep.subr.bf16.mxu1 %v317_v32  ;;  %v353_v24 = vpack.c.bf16 %v130_v22, %v128_v21  ;;  %v132_v27 = vld [vmem:[#allocation6 + $0x1e8] sm:$0xff]  ;;  %v134_v28 = vld [vmem:[#allocation6 + $0x1f8] sm:$0xff]  ;;  %v355_v29 = vpack.c.bf16 %v129_v26, %v127_v25  ;;  %v131_v31 = vld [vmem:[#allocation6 + $0x1e0] sm:$0xff] }
  0x3c   :  { %v357_v30 = vpack.c.bf16 %v134_v28, %v132_v27  ;;  %v133_v32 = vld [vmem:[#allocation6 + $0x1f0] sm:$0xff]  ;;  %v63_v34 = vld [vmem:[#allocation3] sm:$0xff]  ;;  %v66_v36 = vld [vmem:[#allocation3 + $0x18] sm:$0xff] }
  0x3d   :  { %v359_v33 = vpack.c.bf16 %v133_v32, %v131_v31  ;;  %v67_v35 = vld [vmem:[#allocation3 + $0x20] sm:$0xff]  ;;  %v65_v38 = vld [vmem:[#allocation3 + $0x10] sm:$0xff] }
  0x3e   :  { %320 = vmatpush1.bf16.msra.mxu0 %v319_v37  ;;  %382 = vmatpush1.bf16.msra.mxu1 %v319_v37  ;;  %v70_v37 = vld [vmem:[#allocation3 + $0x38] sm:$0xff]  ;;  %v251_v43 = vld [vmem:[%s545_s2] sm:$0x3]  ;;  %s442_s2 = scalar_lea.vmem %s285_s12, 1024 }
  0x3f   :  { %322 = vmatprep.subr.bf16.mxu0 %v321_v39  ;;  %367 = vmatprep.subr.bf16.mxu1 %v321_v39  ;;  %v69_v39 = vld [vmem:[#allocation3 + $0x30] sm:$0xff]  ;;  %p443_p2 = scmp.ne.s32.totalorder %s285_s12, %s442_s2  ;;  %p448_p4 = scmp.lt.s32.totalorder %s442_s2, %s442_s2 }
  0x41   :  { %p449_p5 = por %p448_p4, %p447_p3 }
  0x42   :  { %324 = vmatpush1.bf16.msra.mxu0 %v323_v45  ;;  %383 = vmatpush1.bf16.msra.mxu1 %v323_v45  ;;  %v256_v45 = vrot.slane %v251_v43, %v255_v42 }
  0x43   :  { %326 = vmatprep.subr.bf16.mxu0 %v325_v46  ;;  %368 = vmatprep.subr.bf16.mxu1 %v325_v46  ;;  %v260_v46 = vrot.slane %v251_v43, %v259_v44  ;;  %p450_p6 = pnand %p449_p5, %p443_p2 }
  0x46   :  { %328 = vmatpush1.bf16.msra.mxu0 %v327_v51  ;;  %384 = vmatpush1.bf16.msra.mxu1 %v327_v51 }
  0x47   :  { %330 = vmatprep.subr.bf16.mxu0 %v329_v52  ;;  %369 = vmatprep.subr.bf16.mxu1 %v329_v52 }
  0x4a   :  { %332 = vmatpush1.bf16.msra.mxu0 %v331_v57  ;;  %385 = vmatpush1.bf16.msra.mxu1 %v331_v57 }
  0x4b   :  { %334 = vmatprep.subr.bf16.mxu0 %v333_v58  ;;  %370 = vmatprep.subr.bf16.mxu1 %v333_v58 }
  0x4e   :  { %336 = vmatpush1.bf16.msra.mxu0 %v335_v63  ;;  %386 = vmatpush1.bf16.msra.mxu1 %v335_v63 }
  0x4f   :  { %338 = vmatprep.subr.bf16.mxu0 %v337_v0  ;;  %371 = vmatprep.subr.bf16.mxu1 %v337_v0 }
  0x52   :  { %340 = vmatpush1.bf16.msra.mxu0 %v339_v5  ;;  %387 = vmatpush1.bf16.msra.mxu1 %v339_v5 }
  0x53   :  { %342 = vmatprep.subr.bf16.mxu0 %v341_v6  ;;  %372 = vmatprep.subr.bf16.mxu1 %v341_v6 }
  0x56   :  { %344 = vmatpush1.bf16.msra.mxu0 %v343_v11  ;;  %388 = vmatpush1.bf16.msra.mxu1 %v343_v11 }
  0x57   :  { %346 = vmatprep.subr.bf16.mxu0 %v345_v12  ;;  %373 = vmatprep.subr.bf16.mxu1 %v345_v12 }
  0x5a   :  { %348 = vmatpush1.bf16.msra.mxu0 %v347_v17  ;;  %389 = vmatpush1.bf16.msra.mxu1 %v347_v17 }
  0x5b   :  { %350 = vmatprep.subr.bf16.mxu0 %v349_v18  ;;  %374 = vmatprep.subr.bf16.mxu1 %v349_v18 }
  0x5e   :  { %352 = vmatpush1.bf16.msra.mxu0 %v351_v23  ;;  %390 = vmatpush1.bf16.msra.mxu1 %v351_v23 }
  0x5f   :  { %354 = vmatprep.subr.bf16.mxu0 %v353_v24  ;;  %375 = vmatprep.subr.bf16.mxu1 %v353_v24 }
  0x62   :  { %356 = vmatpush1.bf16.msra.mxu0 %v355_v29  ;;  %391 = vmatpush1.bf16.msra.mxu1 %v355_v29 }
  0x63   :  { %358 = vmatprep.subr.bf16.mxu0 %v357_v30  ;;  %376 = vmatprep.subr.bf16.mxu1 %v357_v30 }
  0x66   :  { %360 = vmatpush1.bf16.msra.mxu0 %v359_v33  ;;  %392 = vmatpush1.bf16.msra.mxu1 %v359_v33 }
  0x69   :  { %200 = vmatmul.mubr.f32.vlgmr.msra.gmra.mrb[0].mxu0 %v63_v34  ;;  %212 = vmatmul.mubr.f32.vlgmr.msra.gmra.mrb[0].mxu1 %v67_v35 }
  0x6a   :  { %205 = vmatprep.mubr.f32.mxu0 %v66_v36  ;;  %217 = vmatprep.mubr.f32.mxu1 %v70_v37 }
  0x6d   :  { %206 = vmatmul.mubr.f32.gmra.mrb[2].mxu0 %v65_v38  ;;  %218 = vmatmul.mubr.f32.gmra.mrb[2].mxu1 %v69_v39 }
 0x13c   :  { %v201_v47 = vpop.f32.mrb[0].mxu0  ;;  %v213_v48 = vpop.f32.mrb[0].mxu1 }
 0x13d   :  { %v263_v49 = vadd.f32 %v256_v45, %v201_v47  ;;  %v267_v50 = vadd.f32 %v256_v45, %v213_v48  ;;  %v203_v51 = vpop.f32.mrb[1].mxu0  ;;  %v215_v52 = vpop.f32.mrb[1].mxu1 }
 0x13e   :  { %v264_v53 = vadd.f32 %v260_v46, %v203_v51  ;;  %v268_v54 = vadd.f32 %v260_v46, %v215_v52 }
 0x13f   :  { %271 = vst [vmem:[#allocation8] sm:$0xff] %v263_v49  ;;  %275 = vst [vmem:[#allocation8 + $0x20] sm:$0xff] %v267_v50 }
 0x140   :  { %272 = vst [vmem:[#allocation8 + $0x8] sm:$0xff] %v264_v53  ;;  %276 = vst [vmem:[#allocation8 + $0x28] sm:$0xff] %v268_v54  ;;  %v207_v55 = vpop.f32.mrb[2].mxu0  ;;  %v219_v56 = vpop.f32.mrb[2].mxu1 }
 0x141   :  { %v265_v57 = vadd.f32 %v256_v45, %v207_v55  ;;  %v269_v58 = vadd.f32 %v256_v45, %v219_v56  ;;  %v209_v59 = vpop.f32.mrb[3].mxu0  ;;  %v221_v60 = vpop.f32.mrb[3].mxu1 }
 0x142   :  { %v266_v61 = vadd.f32 %v260_v46, %v209_v59  ;;  %v270_v62 = vadd.f32 %v260_v46, %v221_v60 }
 0x143   :  { %273 = vst [vmem:[#allocation8 + $0x10] sm:$0xff] %v265_v57  ;;  %277 = vst [vmem:[#allocation8 + $0x30] sm:$0xff] %v269_v58 }
 0x144   :  { %274 = vst [vmem:[#allocation8 + $0x18] sm:$0xff] %v266_v61  ;;  %278 = vst [vmem:[#allocation8 + $0x38] sm:$0xff] %v270_v62 }
 0x145   :  { %453 = shalt.err (!%p450_p6)
}
 0x146   :  { %s454_s15 = scalar_lea.hbm %s546_s3, 1024 }
 0x147   :  { %p455_p7 = scmp.ne.s32.totalorder %s546_s3, %s454_s15  ;;  %p458_p8 = scmp.lt.u32.totalorder %s454_s15, %s546_s3 }
 0x149   :  { %p460_p9 = pnand %p458_p8, %p455_p7 }
 0x14b   :  { %463 = shalt.err (!%p460_p9)
}
 0x14c   :  { %290 = dma.vmem_to_hbm [thread:$0]  %s285_s12, 1024, %s546_s3, [#allocation5], %s471_s22, %s471_s22, %s472_s23  }
 0x14d   :  { %468 = dma.done.wait [#allocation5], 1024  }
 0x14e   :  { %469 = vsyncadd [#allocation5], 4294966272 }
 0x14f   :  { %294 = vsyncpa [#allocation4], 1 }
 0x150   :  { %295 = vsyncpa [#allocation7], 1 }
 0x151   :  { %296 = vsyncpa [#allocation5], 1 }

</bundles_post_ra>
